<compile_context>
chip_gen: v7x
topology: tpu7x:2x2x1
jax: 0.10.0
libtpu: 0.0.40
codegen_flags: <defaults>
</compile_context>

<pallas_src>
import functools
import math

import jax
import jax.numpy as jnp
import numpy as np
from jax import lax
from jax.experimental import pallas as pl
from jax.experimental.pallas import tpu as pltpu


def _layernorm_f32(v, w, b, eps=1e-5):
    mu = jnp.mean(v, axis=-1, keepdims=True)
    var = jnp.mean((v - mu) ** 2, axis=-1, keepdims=True)
    return (v - mu) * jax.lax.rsqrt(var + eps) * w + b


def _block_kernel(x_ref,
                  ln1w_ref, ln1b_ref,
                  wqkv_ref, bqkv_ref,
                  wo_ref, bo_ref,
                  ln2w_ref, ln2b_ref,
                  wfc_ref, bfc_ref,
                  wproj_ref, bproj_ref,
                  o_ref,
                  attn_sc, h2_sc, acc_sc,
                  *, d_model, n_head, group):
    """One (batch, mlp_chunk) grid step.  Attention runs only at chunk 0."""
    d_head = d_model // n_head
    gw = group * d_head                   # lane width of one head group
    n_groups = n_head // group
    c = pl.program_id(1)

    # ---- chunk 0: x1 = x + attn(ln_1(x)); persist x1 / ln_2(x1) in scratch ---
    @pl.when(c == 0)
    def _attention_phase():
        x = x_ref[0].astype(jnp.float32)                                  # (L, D)
        h = _layernorm_f32(x, ln1w_ref[...], ln1b_ref[...]).astype(jnp.bfloat16)

        # TODO(synk): a head-batched (H, L, d_head) dot_general would pack the
        # 256-deep MXU better on v6e/v7x; kept as a static group loop to avoid
        # in-kernel second-minor transposes / dynamic lane offsets.
        for g in range(n_groups):                      # static unroll over groups
            base = g * 3 * gw
            # Grouped qkv projection: only an (L, 3*gw) f32 slab is live.
            qkv_g = (jnp.dot(h, wqkv_ref[:, base:base + 3 * gw],
                             preferred_element_type=jnp.float32)
                     + bqkv_ref[:, base:base + 3 * gw])
            qg = qkv_g[:, 0 * gw:1 * gw].astype(jnp.bfloat16)   # pre-scaled q
            kg = qkv_g[:, 1 * gw:2 * gw].astype(jnp.bfloat16)
            vg = qkv_g[:, 2 * gw:3 * gw].astype(jnp.bfloat16)
            outs = []
            for j in range(group):
                lo, hi = j * d_head, (j + 1) * d_head
                # q @ k^T without materializing a transpose.
                s = lax.dot_general(qg[:, lo:hi], kg[:, lo:hi],
                                    (((1,), (1,)), ((), ())),
                                    preferred_element_type=jnp.float32)   # (L, L)
                s = s - jnp.max(s, axis=-1, keepdims=True)
                p = jnp.exp(s)
                rs = jnp.sum(p, axis=-1, keepdims=True)
                pv = jnp.dot(p.astype(jnp.bfloat16), vg[:, lo:hi],
                             preferred_element_type=jnp.float32)          # (L, dh)
                # Normalize after P@V: scale (L, dh) in f32 instead of (L, L).
                outs.append(pv * pl.reciprocal(rs, approx=True))
            blk = outs[0] if group == 1 else jnp.concatenate(outs, axis=1)
            attn_sc[:, g * gw:(g + 1) * gw] = blk        # lane-dense (L, gw) store

        attn = jnp.dot(attn_sc[...].astype(jnp.bfloat16), wo_ref[...],
                       preferred_element_type=jnp.float32) + bo_ref[...]
        x1 = x + attn
        h2_sc[...] = _layernorm_f32(x1, ln2w_ref[...],
                                    ln2b_ref[...]).astype(jnp.bfloat16)
        acc_sc[...] = x1 + bproj_ref[...]               # residual + c_proj bias

    # ---- every chunk: one Fc-wide slice of the MLP ---------------------------
    fc = (jnp.dot(h2_sc[...], wfc_ref[...],
                  preferred_element_type=jnp.float32) + bfc_ref[...])     # (L, Fc)
    fc = fc * jax.nn.sigmoid(1.702 * fc)                                  # QuickGELU
    acc_sc[...] += jnp.dot(fc.astype(jnp.bfloat16), wproj_ref[...],
                           preferred_element_type=jnp.float32)

    @pl.when(c == pl.num_programs(1) - 1)
    def _finalize():
        o_ref[0] = acc_sc[...].astype(o_ref.dtype)


def residual_attention_block_nld(x_nld, params, n_head, *, ff_chunk=512):
    """Batch-major entry point.  x_nld: (N, L, D) f32.  Returns (N, L, D)."""
    N, L, D = x_nld.shape
    assert D % n_head == 0
    d_head = D // n_head
    scale = 1.0 / math.sqrt(d_head)
    wdtype = jnp.bfloat16

    # Head grouping: widest group whose PV slab is lane-dense (>=128 lanes when
    # d_head allows) and that divides n_head.
    group = min(max(1, 128 // d_head), n_head)
    while n_head % group:
        group -= 1
    gw = group * d_head
    n_groups = n_head // group

    # Column permutation so each group's [Q_g | K_g | V_g] columns are contiguous.
    perm = np.concatenate([
        np.arange(part * D + g * gw, part * D + (g + 1) * gw)
        for g in range(n_groups) for part in range(3)])

    # PyTorch Linear is y = x @ W.T + b -> pre-transpose weights.  Fold the
    # softmax scale into the Q columns (before the bf16 cast and permutation).
    scale_vec = np.concatenate([np.full((D,), scale, np.float32),
                                np.ones((2 * D,), np.float32)])
    wqkv = params["in_proj_weight"].T.astype(jnp.float32) * scale_vec[None, :]
    wqkv = wqkv[:, perm].astype(wdtype)                                  # (D, 3D)
    bqkv = (params["in_proj_bias"].astype(jnp.float32) * scale_vec)[perm][None, :]
    wo = params["out_proj_weight"].T.astype(wdtype)                      # (D, D)
    bo = params["out_proj_bias"][None, :].astype(jnp.float32)
    ln1w = params["ln1_weight"][None, :].astype(jnp.float32)
    ln1b = params["ln1_bias"][None, :].astype(jnp.float32)
    ln2w = params["ln2_weight"][None, :].astype(jnp.float32)
    ln2b = params["ln2_bias"][None, :].astype(jnp.float32)
    wfc = params["c_fc_weight"].T.astype(wdtype)                         # (D, 4D)
    bfc = params["c_fc_bias"][None, :].astype(jnp.float32)               # (1, 4D)
    wproj = params["c_proj_weight"].T.astype(wdtype)                     # (4D, D)
    bproj = params["c_proj_bias"][None, :].astype(jnp.float32)           # (1, D)

    # MLP chunking: the inner grid axis streams (D, Fc) / (Fc, D) weight blocks.
    d_ff = 4 * D
    n_chunks = max(1, d_ff // max(1, min(ff_chunk, d_ff)))
    if d_ff % n_chunks:
        n_chunks = 1
    Fc = d_ff // n_chunks
    if n_chunks > 1 and Fc % 128:
        n_chunks, Fc = 1, d_ff

    def const_spec(shape):
        def imap(b, c):
            return (0,) * len(shape)
        return pl.BlockSpec(shape, imap)

    kernel = functools.partial(_block_kernel, d_model=D, n_head=n_head, group=group)

    # Per-generation VMEM budget: estimate the working set, leave ~8 MiB headroom.
    try:
        vmem_cap = int(pltpu.get_tpu_info().vmem_capacity_bytes)
    except Exception:  # interpret mode / older runtimes
        vmem_cap = 128 * 1024 * 1024
    weight_bytes = 2 * 2 * (3 * D * D + D * D)        # wqkv + wo (bf16, dbl-buffered)
    weight_bytes += 2 * 2 * 2 * (D * Fc)              # wfc + wproj chunks (bf16, dbl-buf)
    io_bytes = 2 * 2 * (L * D * 4)                    # x + out blocks (f32, dbl-buf)
    scratch_bytes = (4 + 2 + 4) * L * D                # attn_sc + h2_sc + acc_sc
    live_bytes = (4 * 3 + 2 * 2) * L * D + 2 * 4 * L * L + 4 * L * Fc + 4 * L * 3 * gw
    small_bytes = 2 * 4 * (3 * D + d_ff + 8 * D)
    est = int(1.3 * (weight_bytes + io_bytes + scratch_bytes + live_bytes + small_bytes))
    vmem_limit = int(min(max(est, 32 << 20), vmem_cap - (8 << 20)))

    out = pl.pallas_call(
        kernel,
        out_shape=jax.ShapeDtypeStruct((N, L, D), x_nld.dtype),
        grid_spec=pltpu.PrefetchScalarGridSpec(
            num_scalar_prefetch=0,
            grid=(N, n_chunks),
            in_specs=[
                pl.BlockSpec((1, L, D), lambda b, c: (b, 0, 0)),     # x
                const_spec((1, D)), const_spec((1, D)),              # ln1 w/b
                const_spec((D, 3 * D)), const_spec((1, 3 * D)),      # in_proj (grouped, scaled)
                const_spec((D, D)), const_spec((1, D)),              # out_proj
                const_spec((1, D)), const_spec((1, D)),              # ln2 w/b
                pl.BlockSpec((D, Fc), lambda b, c: (0, c)),          # c_fc weight chunk
                pl.BlockSpec((1, Fc), lambda b, c: (0, c)),          # c_fc bias chunk
                pl.BlockSpec((Fc, D), lambda b, c: (c, 0)),          # c_proj weight chunk
                const_spec((1, D)),                                  # c_proj bias
            ],
            out_specs=pl.BlockSpec((1, L, D), lambda b, c: (b, 0, 0)),
            scratch_shapes=[
                pltpu.VMEM((L, D), jnp.float32),    # per-group attention output slab
                pltpu.VMEM((L, D), jnp.bfloat16),   # ln_2(x1), persisted across chunks
                pltpu.VMEM((L, D), jnp.float32),    # residual + MLP accumulator
            ]),
        compiler_params=pltpu.CompilerParams(
            dimension_semantics=("parallel", "arbitrary"),
            vmem_limit_bytes=vmem_limit),
    )(x_nld, ln1w, ln1b, wqkv, bqkv, wo, bo, ln2w, ln2b, wfc, bfc, wproj, bproj)
    return out


def residual_attention_block(x_lnd, params, n_head, *, ff_chunk=512):
    """x_lnd: (L, N, D) f32 (PyTorch MultiheadAttention layout). Returns (L, N, D)."""
    # Callers that can keep activations batch-major should use
    # residual_attention_block_nld directly and skip these two HBM transposes.
    x = jnp.transpose(x_lnd, (1, 0, 2))                  # (N, L, D)
    out = residual_attention_block_nld(x, params, n_head, ff_chunk=ff_chunk)
    return jnp.transpose(out, (1, 0, 2))                 # back to (L, N, D)


def make_params(key, d_model):
    ks = jax.random.split(key, 8)
    s = 0.02
    return {
        "in_proj_weight": s * jax.random.normal(ks[0], (3 * d_model, d_model), jnp.float32),
        "in_proj_bias": s * jax.random.normal(ks[1], (3 * d_model,), jnp.float32),
        "out_proj_weight": s * jax.random.normal(ks[2], (d_model, d_model), jnp.float32),
        "out_proj_bias": s * jax.random.normal(ks[3], (d_model,), jnp.float32),
        "ln1_weight": jnp.ones((d_model,), jnp.float32),
        "ln1_bias": jnp.zeros((d_model,), jnp.float32),
        "ln2_weight": jnp.ones((d_model,), jnp.float32),
        "ln2_bias": jnp.zeros((d_model,), jnp.float32),
        "c_fc_weight": s * jax.random.normal(ks[4], (4 * d_model, d_model), jnp.float32),
        "c_fc_bias": s * jax.random.normal(ks[5], (4 * d_model,), jnp.float32),
        "c_proj_weight": s * jax.random.normal(ks[6], (d_model, 4 * d_model), jnp.float32),
        "c_proj_bias": s * jax.random.normal(ks[7], (d_model,), jnp.float32),
    }


def reference(x_lnd, params, n_head):
    """Plain-JAX f32 reference mirroring the PyTorch forward_impl (eval mode)."""
    L, N, D = x_lnd.shape
    dh = D // n_head

    def ln(v, w, b):
        mu = jnp.mean(v, -1, keepdims=True)
        var = jnp.mean((v - mu) ** 2, -1, keepdims=True)
        return (v - mu) / jnp.sqrt(var + 1e-5) * w + b

    x = x_lnd
    h = ln(x, params["ln1_weight"], params["ln1_bias"])
    qkv = h @ params["in_proj_weight"].T + params["in_proj_bias"]
    q, k, v = jnp.split(qkv, 3, axis=-1)

    def heads(t):  # (L, N, D) -> (N*H, L, dh)
        return t.reshape(L, N * n_head, dh).transpose(1, 0, 2)

    qh, kh, vh = heads(q) / math.sqrt(dh), heads(k), heads(v)
    s = jnp.einsum("bld,bmd->blm", qh, kh)
    p = jax.nn.softmax(s, axis=-1)
    o = jnp.einsum("blm,bmd->bld", p, vh)               # (N*H, L, dh)
    o = o.transpose(1, 0, 2).reshape(L, N, D)
    o = o @ params["out_proj_weight"].T + params["out_proj_bias"]
    x = x + o

    h2 = ln(x, params["ln2_weight"], params["ln2_bias"])
    fc = h2 @ params["c_fc_weight"].T + params["c_fc_bias"]
    fc = fc * jax.nn.sigmoid(1.702 * fc)
    x = x + fc @ params["c_proj_weight"].T + params["c_proj_bias"]
    return x


if __name__ == "__main__":
    L, N, D, H = 8, 2, 32, 4
    key = jax.random.PRNGKey(0)
    kx, kp = jax.random.split(key)
    x = jax.random.normal(kx, (L, N, D), jnp.float32)
    params = make_params(kp, D)

    out = residual_attention_block(x, params, H)
    out = jax.block_until_ready(out)

    ref = reference(x, params, H)
    assert out.shape == (L, N, D)
    # bf16 MXU operands + approx reciprocal -> compare against f32 reference
    # with a correspondingly relaxed tolerance.
    max_err = float(jnp.max(jnp.abs(out - ref)))
    assert jnp.allclose(out, ref, atol=1e-2, rtol=1e-2), max_err
    print("KERNEL_OK")
</pallas_src>

<mosaic_0001>
module attributes {stable_mosaic.version = 11 : i64} {
  func.func @_block_kernel(%arg0: i32, %arg1: i32, %arg2: memref<1x8x32xf32, #tpu.memory_space<vmem>>, %arg3: memref<1x32xf32, #tpu.memory_space<vmem>>, %arg4: memref<1x32xf32, #tpu.memory_space<vmem>>, %arg5: memref<32x96xbf16, #tpu.memory_space<vmem>>, %arg6: memref<1x96xf32, #tpu.memory_space<vmem>>, %arg7: memref<32x32xbf16, #tpu.memory_space<vmem>>, %arg8: memref<1x32xf32, #tpu.memory_space<vmem>>, %arg9: memref<1x32xf32, #tpu.memory_space<vmem>>, %arg10: memref<1x32xf32, #tpu.memory_space<vmem>>, %arg11: memref<32x128xbf16, #tpu.memory_space<vmem>>, %arg12: memref<1x128xf32, #tpu.memory_space<vmem>>, %arg13: memref<128x32xbf16, #tpu.memory_space<vmem>>, %arg14: memref<1x32xf32, #tpu.memory_space<vmem>>, %arg15: memref<1x8x32xf32, #tpu.memory_space<vmem>>, %arg16: memref<8x32xf32, #tpu.memory_space<vmem>>, %arg17: memref<8x32xbf16, #tpu.memory_space<vmem>>, %arg18: memref<8x32xf32, #tpu.memory_space<vmem>>) attributes {dimension_semantics = [#tpu.dimension_semantics<parallel>, #tpu.dimension_semantics<arbitrary>], iteration_bounds = array<i64: 2, 1>, scalar_prefetch = 0 : i64, scratch_operands = 3 : i64, tpu.core_type = #tpu.core_type<tc>, window_params = [{transform_indices = @transform_0, window_bounds = array<i64: 1, 8, 32>}, {pipeline_mode = #tpu.pipeline_mode<synchronous>, transform_indices = @transform_1, window_bounds = array<i64: 1, 32>}, {pipeline_mode = #tpu.pipeline_mode<synchronous>, transform_indices = @transform_2, window_bounds = array<i64: 1, 32>}, {pipeline_mode = #tpu.pipeline_mode<synchronous>, transform_indices = @transform_3, window_bounds = array<i64: 32, 96>}, {pipeline_mode = #tpu.pipeline_mode<synchronous>, transform_indices = @transform_4, window_bounds = array<i64: 1, 96>}, {pipeline_mode = #tpu.pipeline_mode<synchronous>, transform_indices = @transform_5, window_bounds = array<i64: 32, 32>}, {pipeline_mode = #tpu.pipeline_mode<synchronous>, transform_indices = @transform_6, window_bounds = array<i64: 1, 32>}, {pipeline_mode = #tpu.pipeline_mode<synchronous>, transform_indices = @transform_7, window_bounds = array<i64: 1, 32>}, {pipeline_mode = #tpu.pipeline_mode<synchronous>, transform_indices = @transform_8, window_bounds = array<i64: 1, 32>}, {transform_indices = @transform_9, window_bounds = array<i64: 32, 128>}, {transform_indices = @transform_10, window_bounds = array<i64: 1, 128>}, {transform_indices = @transform_11, window_bounds = array<i64: 128, 32>}, {pipeline_mode = #tpu.pipeline_mode<synchronous>, transform_indices = @transform_12, window_bounds = array<i64: 1, 32>}, {transform_indices = @transform_13, window_bounds = array<i64: 1, 8, 32>}]} {
    %c0_i32 = arith.constant 0 : i32
    %0 = arith.cmpi eq, %arg1, %c0_i32 : i32
    %1 = arith.extui %0 : i1 to i32
    %c0_i32_0 = arith.constant 0 : i32
    %2 = arith.cmpi ne, %1, %c0_i32_0 : i32
    scf.if %2 {
      %c0_17 = arith.constant 0 : index
      %c0_18 = arith.constant 0 : index
      %c0_19 = arith.constant 0 : index
      %26 = vector.load %arg2[%c0_17, %c0_18, %c0_19] : memref<1x8x32xf32, #tpu.memory_space<vmem>>, vector<1x8x32xf32>
      %27 = vector.shape_cast %26 : vector<1x8x32xf32> to vector<8x32xf32>
      %c0_20 = arith.constant 0 : index
      %c0_21 = arith.constant 0 : index
      %28 = vector.load %arg3[%c0_20, %c0_21] : memref<1x32xf32, #tpu.memory_space<vmem>>, vector<1x32xf32>
      %c0_22 = arith.constant 0 : index
      %c0_23 = arith.constant 0 : index
      %29 = vector.load %arg4[%c0_22, %c0_23] : memref<1x32xf32, #tpu.memory_space<vmem>>, vector<1x32xf32>
      %cst_24 = arith.constant dense<0.000000e+00> : vector<8xf32>
      %30 = vector.multi_reduction <add>, %27, %cst_24 [1] : vector<8x32xf32> to vector<8xf32>
      %31 = vector.shape_cast %30 : vector<8xf32> to vector<8x1xf32>
      %cst_25 = arith.constant 3.200000e+01 : f32
      %32 = vector.broadcast %cst_25 : f32 to vector<8x1xf32>
      %33 = arith.divf %31, %32 : vector<8x1xf32>
      %34 = vector.broadcast %33 : vector<8x1xf32> to vector<8x32xf32>
      %35 = arith.subf %27, %34 : vector<8x32xf32>
      %36 = arith.mulf %35, %35 : vector<8x32xf32>
      %cst_26 = arith.constant dense<0.000000e+00> : vector<8xf32>
      %37 = vector.multi_reduction <add>, %36, %cst_26 [1] : vector<8x32xf32> to vector<8xf32>
      %38 = vector.shape_cast %37 : vector<8xf32> to vector<8x1xf32>
      %cst_27 = arith.constant 3.200000e+01 : f32
      %39 = vector.broadcast %cst_27 : f32 to vector<8x1xf32>
      %40 = arith.divf %38, %39 : vector<8x1xf32>
      %41 = vector.broadcast %33 : vector<8x1xf32> to vector<8x32xf32>
      %42 = arith.subf %27, %41 : vector<8x32xf32>
      %cst_28 = arith.constant 9.99999974E-6 : f32
      %43 = vector.broadcast %cst_28 : f32 to vector<8x1xf32>
      %44 = arith.addf %40, %43 : vector<8x1xf32>
      %45 = math.rsqrt %44 : vector<8x1xf32>
      %46 = vector.broadcast %45 : vector<8x1xf32> to vector<8x32xf32>
      %47 = arith.mulf %42, %46 : vector<8x32xf32>
      %48 = vector.broadcast %28 : vector<1x32xf32> to vector<8x32xf32>
      %49 = arith.mulf %47, %48 : vector<8x32xf32>
      %50 = vector.broadcast %29 : vector<1x32xf32> to vector<8x32xf32>
      %51 = arith.addf %49, %50 : vector<8x32xf32>
      %52 = arith.truncf %51 : vector<8x32xf32> to vector<8x32xbf16>
      %c0_29 = arith.constant 0 : index
      %c0_30 = arith.constant 0 : index
      %53 = vector.load %arg5[%c0_29, %c0_30] : memref<32x96xbf16, #tpu.memory_space<vmem>>, vector<32x96xbf16>
      %cst_31 = arith.constant dense<0.000000e+00> : vector<8x96xf32>
      %54 = tpu.matmul %52, %53, %cst_31 {dimension_numbers = #tpu.dot_dimension_numbers<[1], [0], [0], [1], [0, 0, 1, 1], [], []>} : vector<8x32xbf16>, vector<32x96xbf16>, vector<8x96xf32> -> vector<8x96xf32>
      %c0_32 = arith.constant 0 : index
      %c0_33 = arith.constant 0 : index
      %55 = vector.load %arg6[%c0_32, %c0_33] : memref<1x96xf32, #tpu.memory_space<vmem>>, vector<1x96xf32>
      %56 = vector.broadcast %55 : vector<1x96xf32> to vector<8x96xf32>
      %57 = arith.addf %54, %56 : vector<8x96xf32>
      %58 = vector.extract_strided_slice %57 {offsets = [0, 0], sizes = [8, 32], strides = [1, 1]} : vector<8x96xf32> to vector<8x32xf32>
      %59 = arith.truncf %58 : vector<8x32xf32> to vector<8x32xbf16>
      %60 = vector.extract_strided_slice %57 {offsets = [0, 32], sizes = [8, 32], strides = [1, 1]} : vector<8x96xf32> to vector<8x32xf32>
      %61 = arith.truncf %60 : vector<8x32xf32> to vector<8x32xbf16>
      %62 = vector.extract_strided_slice %57 {offsets = [0, 64], sizes = [8, 32], strides = [1, 1]} : vector<8x96xf32> to vector<8x32xf32>
      %63 = arith.truncf %62 : vector<8x32xf32> to vector<8x32xbf16>
      %64 = vector.extract_strided_slice %59 {offsets = [0, 0], sizes = [8, 8], strides = [1, 1]} : vector<8x32xbf16> to vector<8x8xbf16>
      %65 = vector.extract_strided_slice %61 {offsets = [0, 0], sizes = [8, 8], strides = [1, 1]} : vector<8x32xbf16> to vector<8x8xbf16>
      %cst_34 = arith.constant dense<0.000000e+00> : vector<8x8xf32>
      %66 = tpu.matmul %64, %65, %cst_34 {dimension_numbers = #tpu.dot_dimension_numbers<[1], [1], [0], [0], [0, 0, 1, 0], [], []>} : vector<8x8xbf16>, vector<8x8xbf16>, vector<8x8xf32> -> vector<8x8xf32>
      %cst_35 = arith.constant dense<0xFF800000> : vector<8xf32>
      %67 = vector.multi_reduction <maximumf>, %66, %cst_35 [1] : vector<8x8xf32> to vector<8xf32>
      %68 = vector.shape_cast %67 : vector<8xf32> to vector<8x1xf32>
      %69 = vector.broadcast %68 : vector<8x1xf32> to vector<8x8xf32>
      %70 = arith.subf %66, %69 : vector<8x8xf32>
      %71 = math.exp %70 : vector<8x8xf32>
      %cst_36 = arith.constant dense<0.000000e+00> : vector<8xf32>
      %72 = vector.multi_reduction <add>, %71, %cst_36 [1] : vector<8x8xf32> to vector<8xf32>
      %73 = vector.shape_cast %72 : vector<8xf32> to vector<8x1xf32>
      %74 = arith.truncf %71 : vector<8x8xf32> to vector<8x8xbf16>
      %75 = vector.extract_strided_slice %63 {offsets = [0, 0], sizes = [8, 8], strides = [1, 1]} : vector<8x32xbf16> to vector<8x8xbf16>
      %cst_37 = arith.constant dense<0.000000e+00> : vector<8x8xf32>
      %76 = tpu.matmul %74, %75, %cst_37 {dimension_numbers = #tpu.dot_dimension_numbers<[1], [0], [0], [1], [0, 0, 1, 1], [], []>} : vector<8x8xbf16>, vector<8x8xbf16>, vector<8x8xf32> -> vector<8x8xf32>
      %77 = tpu.reciprocal %73 {approx = true} : vector<8x1xf32> -> vector<8x1xf32>
      %78 = vector.broadcast %77 : vector<8x1xf32> to vector<8x8xf32>
      %79 = arith.mulf %76, %78 : vector<8x8xf32>
      %80 = vector.extract_strided_slice %59 {offsets = [0, 8], sizes = [8, 8], strides = [1, 1]} : vector<8x32xbf16> to vector<8x8xbf16>
      %81 = vector.extract_strided_slice %61 {offsets = [0, 8], sizes = [8, 8], strides = [1, 1]} : vector<8x32xbf16> to vector<8x8xbf16>
      %cst_38 = arith.constant dense<0.000000e+00> : vector<8x8xf32>
      %82 = tpu.matmul %80, %81, %cst_38 {dimension_numbers = #tpu.dot_dimension_numbers<[1], [1], [0], [0], [0, 0, 1, 0], [], []>} : vector<8x8xbf16>, vector<8x8xbf16>, vector<8x8xf32> -> vector<8x8xf32>
      %cst_39 = arith.constant dense<0xFF800000> : vector<8xf32>
      %83 = vector.multi_reduction <maximumf>, %82, %cst_39 [1] : vector<8x8xf32> to vector<8xf32>
      %84 = vector.shape_cast %83 : vector<8xf32> to vector<8x1xf32>
      %85 = vector.broadcast %84 : vector<8x1xf32> to vector<8x8xf32>
      %86 = arith.subf %82, %85 : vector<8x8xf32>
      %87 = math.exp %86 : vector<8x8xf32>
      %cst_40 = arith.constant dense<0.000000e+00> : vector<8xf32>
      %88 = vector.multi_reduction <add>, %87, %cst_40 [1] : vector<8x8xf32> to vector<8xf32>
      %89 = vector.shape_cast %88 : vector<8xf32> to vector<8x1xf32>
      %90 = arith.truncf %87 : vector<8x8xf32> to vector<8x8xbf16>
      %91 = vector.extract_strided_slice %63 {offsets = [0, 8], sizes = [8, 8], strides = [1, 1]} : vector<8x32xbf16> to vector<8x8xbf16>
      %cst_41 = arith.constant dense<0.000000e+00> : vector<8x8xf32>
      %92 = tpu.matmul %90, %91, %cst_41 {dimension_numbers = #tpu.dot_dimension_numbers<[1], [0], [0], [1], [0, 0, 1, 1], [], []>} : vector<8x8xbf16>, vector<8x8xbf16>, vector<8x8xf32> -> vector<8x8xf32>
      %93 = tpu.reciprocal %89 {approx = true} : vector<8x1xf32> -> vector<8x1xf32>
      %94 = vector.broadcast %93 : vector<8x1xf32> to vector<8x8xf32>
      %95 = arith.mulf %92, %94 : vector<8x8xf32>
      %96 = vector.extract_strided_slice %59 {offsets = [0, 16], sizes = [8, 8], strides = [1, 1]} : vector<8x32xbf16> to vector<8x8xbf16>
      %97 = vector.extract_strided_slice %61 {offsets = [0, 16], sizes = [8, 8], strides = [1, 1]} : vector<8x32xbf16> to vector<8x8xbf16>
      %cst_42 = arith.constant dense<0.000000e+00> : vector<8x8xf32>
      %98 = tpu.matmul %96, %97, %cst_42 {dimension_numbers = #tpu.dot_dimension_numbers<[1], [1], [0], [0], [0, 0, 1, 0], [], []>} : vector<8x8xbf16>, vector<8x8xbf16>, vector<8x8xf32> -> vector<8x8xf32>
      %cst_43 = arith.constant dense<0xFF800000> : vector<8xf32>
      %99 = vector.multi_reduction <maximumf>, %98, %cst_43 [1] : vector<8x8xf32> to vector<8xf32>
      %100 = vector.shape_cast %99 : vector<8xf32> to vector<8x1xf32>
      %101 = vector.broadcast %100 : vector<8x1xf32> to vector<8x8xf32>
      %102 = arith.subf %98, %101 : vector<8x8xf32>
      %103 = math.exp %102 : vector<8x8xf32>
      %cst_44 = arith.constant dense<0.000000e+00> : vector<8xf32>
      %104 = vector.multi_reduction <add>, %103, %cst_44 [1] : vector<8x8xf32> to vector<8xf32>
      %105 = vector.shape_cast %104 : vector<8xf32> to vector<8x1xf32>
      %106 = arith.truncf %103 : vector<8x8xf32> to vector<8x8xbf16>
      %107 = vector.extract_strided_slice %63 {offsets = [0, 16], sizes = [8, 8], strides = [1, 1]} : vector<8x32xbf16> to vector<8x8xbf16>
      %cst_45 = arith.constant dense<0.000000e+00> : vector<8x8xf32>
      %108 = tpu.matmul %106, %107, %cst_45 {dimension_numbers = #tpu.dot_dimension_numbers<[1], [0], [0], [1], [0, 0, 1, 1], [], []>} : vector<8x8xbf16>, vector<8x8xbf16>, vector<8x8xf32> -> vector<8x8xf32>
      %109 = tpu.reciprocal %105 {approx = true} : vector<8x1xf32> -> vector<8x1xf32>
      %110 = vector.broadcast %109 : vector<8x1xf32> to vector<8x8xf32>
      %111 = arith.mulf %108, %110 : vector<8x8xf32>
      %112 = vector.extract_strided_slice %59 {offsets = [0, 24], sizes = [8, 8], strides = [1, 1]} : vector<8x32xbf16> to vector<8x8xbf16>
      %113 = vector.extract_strided_slice %61 {offsets = [0, 24], sizes = [8, 8], strides = [1, 1]} : vector<8x32xbf16> to vector<8x8xbf16>
      %cst_46 = arith.constant dense<0.000000e+00> : vector<8x8xf32>
      %114 = tpu.matmul %112, %113, %cst_46 {dimension_numbers = #tpu.dot_dimension_numbers<[1], [1], [0], [0], [0, 0, 1, 0], [], []>} : vector<8x8xbf16>, vector<8x8xbf16>, vector<8x8xf32> -> vector<8x8xf32>
      %cst_47 = arith.constant dense<0xFF800000> : vector<8xf32>
      %115 = vector.multi_reduction <maximumf>, %114, %cst_47 [1] : vector<8x8xf32> to vector<8xf32>
      %116 = vector.shape_cast %115 : vector<8xf32> to vector<8x1xf32>
      %117 = vector.broadcast %116 : vector<8x1xf32> to vector<8x8xf32>
      %118 = arith.subf %114, %117 : vector<8x8xf32>
      %119 = math.exp %118 : vector<8x8xf32>
      %cst_48 = arith.constant dense<0.000000e+00> : vector<8xf32>
      %120 = vector.multi_reduction <add>, %119, %cst_48 [1] : vector<8x8xf32> to vector<8xf32>
      %121 = vector.shape_cast %120 : vector<8xf32> to vector<8x1xf32>
      %122 = arith.truncf %119 : vector<8x8xf32> to vector<8x8xbf16>
      %123 = vector.extract_strided_slice %63 {offsets = [0, 24], sizes = [8, 8], strides = [1, 1]} : vector<8x32xbf16> to vector<8x8xbf16>
      %cst_49 = arith.constant dense<0.000000e+00> : vector<8x8xf32>
      %124 = tpu.matmul %122, %123, %cst_49 {dimension_numbers = #tpu.dot_dimension_numbers<[1], [0], [0], [1], [0, 0, 1, 1], [], []>} : vector<8x8xbf16>, vector<8x8xbf16>, vector<8x8xf32> -> vector<8x8xf32>
      %125 = tpu.reciprocal %121 {approx = true} : vector<8x1xf32> -> vector<8x1xf32>
      %126 = vector.broadcast %125 : vector<8x1xf32> to vector<8x8xf32>
      %127 = arith.mulf %124, %126 : vector<8x8xf32>
      %128 = tpu.concatenate %79, %95, %111, %127 in 1 : vector<8x8xf32>, vector<8x8xf32>, vector<8x8xf32>, vector<8x8xf32> -> vector<8x32xf32>
      %c0_50 = arith.constant 0 : index
      %c0_51 = arith.constant 0 : index
      %129 = vector.load %arg16[%c0_50, %c0_51] : memref<8x32xf32, #tpu.memory_space<vmem>>, vector<8x32xf32>
      tpu.vector_store %arg16[%c0_50, %c0_51], %128 {strides = array<i32>} : memref<8x32xf32, #tpu.memory_space<vmem>>, vector<8x32xf32>,
      %c0_52 = arith.constant 0 : index
      %c0_53 = arith.constant 0 : index
      %130 = vector.load %arg16[%c0_52, %c0_53] : memref<8x32xf32, #tpu.memory_space<vmem>>, vector<8x32xf32>
      %131 = arith.truncf %130 : vector<8x32xf32> to vector<8x32xbf16>
      %c0_54 = arith.constant 0 : index
      %c0_55 = arith.constant 0 : index
      %132 = vector.load %arg7[%c0_54, %c0_55] : memref<32x32xbf16, #tpu.memory_space<vmem>>, vector<32x32xbf16>
      %cst_56 = arith.constant dense<0.000000e+00> : vector<8x32xf32>
      %133 = tpu.matmul %131, %132, %cst_56 {dimension_numbers = #tpu.dot_dimension_numbers<[1], [0], [0], [1], [0, 0, 1, 1], [], []>} : vector<8x32xbf16>, vector<32x32xbf16>, vector<8x32xf32> -> vector<8x32xf32>
      %c0_57 = arith.constant 0 : index
      %c0_58 = arith.constant 0 : index
      %134 = vector.load %arg8[%c0_57, %c0_58] : memref<1x32xf32, #tpu.memory_space<vmem>>, vector<1x32xf32>
      %135 = vector.broadcast %134 : vector<1x32xf32> to vector<8x32xf32>
      %136 = arith.addf %133, %135 : vector<8x32xf32>
      %137 = arith.addf %27, %136 : vector<8x32xf32>
      %c0_59 = arith.constant 0 : index
      %c0_60 = arith.constant 0 : index
      %138 = vector.load %arg9[%c0_59, %c0_60] : memref<1x32xf32, #tpu.memory_space<vmem>>, vector<1x32xf32>
      %c0_61 = arith.constant 0 : index
      %c0_62 = arith.constant 0 : index
      %139 = vector.load %arg10[%c0_61, %c0_62] : memref<1x32xf32, #tpu.memory_space<vmem>>, vector<1x32xf32>
      %cst_63 = arith.constant dense<0.000000e+00> : vector<8xf32>
      %140 = vector.multi_reduction <add>, %137, %cst_63 [1] : vector<8x32xf32> to vector<8xf32>
      %141 = vector.shape_cast %140 : vector<8xf32> to vector<8x1xf32>
      %cst_64 = arith.constant 3.200000e+01 : f32
      %142 = vector.broadcast %cst_64 : f32 to vector<8x1xf32>
      %143 = arith.divf %141, %142 : vector<8x1xf32>
      %144 = vector.broadcast %143 : vector<8x1xf32> to vector<8x32xf32>
      %145 = arith.subf %137, %144 : vector<8x32xf32>
      %146 = arith.mulf %145, %145 : vector<8x32xf32>
      %cst_65 = arith.constant dense<0.000000e+00> : vector<8xf32>
      %147 = vector.multi_reduction <add>, %146, %cst_65 [1] : vector<8x32xf32> to vector<8xf32>
      %148 = vector.shape_cast %147 : vector<8xf32> to vector<8x1xf32>
      %cst_66 = arith.constant 3.200000e+01 : f32
      %149 = vector.broadcast %cst_66 : f32 to vector<8x1xf32>
      %150 = arith.divf %148, %149 : vector<8x1xf32>
      %151 = vector.broadcast %143 : vector<8x1xf32> to vector<8x32xf32>
      %152 = arith.subf %137, %151 : vector<8x32xf32>
      %cst_67 = arith.constant 9.99999974E-6 : f32
      %153 = vector.broadcast %cst_67 : f32 to vector<8x1xf32>
      %154 = arith.addf %150, %153 : vector<8x1xf32>
      %155 = math.rsqrt %154 : vector<8x1xf32>
      %156 = vector.broadcast %155 : vector<8x1xf32> to vector<8x32xf32>
      %157 = arith.mulf %152, %156 : vector<8x32xf32>
      %158 = vector.broadcast %138 : vector<1x32xf32> to vector<8x32xf32>
      %159 = arith.mulf %157, %158 : vector<8x32xf32>
      %160 = vector.broadcast %139 : vector<1x32xf32> to vector<8x32xf32>
      %161 = arith.addf %159, %160 : vector<8x32xf32>
      %162 = arith.truncf %161 : vector<8x32xf32> to vector<8x32xbf16>
      %c0_68 = arith.constant 0 : index
      %c0_69 = arith.constant 0 : index
      %163 = vector.load %arg17[%c0_68, %c0_69] : memref<8x32xbf16, #tpu.memory_space<vmem>>, vector<8x32xbf16>
      tpu.vector_store %arg17[%c0_68, %c0_69], %162 {strides = array<i32>} : memref<8x32xbf16, #tpu.memory_space<vmem>>, vector<8x32xbf16>,
      %c0_70 = arith.constant 0 : index
      %c0_71 = arith.constant 0 : index
      %164 = vector.load %arg14[%c0_70, %c0_71] : memref<1x32xf32, #tpu.memory_space<vmem>>, vector<1x32xf32>
      %165 = vector.broadcast %164 : vector<1x32xf32> to vector<8x32xf32>
      %166 = arith.addf %137, %165 : vector<8x32xf32>
      %c0_72 = arith.constant 0 : index
      %c0_73 = arith.constant 0 : index
      %167 = vector.load %arg18[%c0_72, %c0_73] : memref<8x32xf32, #tpu.memory_space<vmem>>, vector<8x32xf32>
      tpu.vector_store %arg18[%c0_72, %c0_73], %166 {strides = array<i32>} : memref<8x32xf32, #tpu.memory_space<vmem>>, vector<8x32xf32>,
    } else {
    }
    %c0 = arith.constant 0 : index
    %c0_1 = arith.constant 0 : index
    %3 = vector.load %arg17[%c0, %c0_1] : memref<8x32xbf16, #tpu.memory_space<vmem>>, vector<8x32xbf16>
    %c0_2 = arith.constant 0 : index
    %c0_3 = arith.constant 0 : index
    %4 = vector.load %arg11[%c0_2, %c0_3] : memref<32x128xbf16, #tpu.memory_space<vmem>>, vector<32x128xbf16>
    %cst = arith.constant dense<0.000000e+00> : vector<8x128xf32>
    %5 = tpu.matmul %3, %4, %cst {dimension_numbers = #tpu.dot_dimension_numbers<[1], [0], [0], [1], [0, 0, 1, 1], [], []>} : vector<8x32xbf16>, vector<32x128xbf16>, vector<8x128xf32> -> vector<8x128xf32>
    %c0_4 = arith.constant 0 : index
    %c0_5 = arith.constant 0 : index
    %6 = vector.load %arg12[%c0_4, %c0_5] : memref<1x128xf32, #tpu.memory_space<vmem>>, vector<1x128xf32>
    %7 = vector.broadcast %6 : vector<1x128xf32> to vector<8x128xf32>
    %8 = arith.addf %5, %7 : vector<8x128xf32>
    %cst_6 = arith.constant 1.702000e+00 : f32
    %9 = vector.broadcast %cst_6 : f32 to vector<8x128xf32>
    %10 = arith.mulf %9, %8 : vector<8x128xf32>
    %11 = arith.negf %10 : vector<8x128xf32>
    %12 = math.exp %11 : vector<8x128xf32>
    %cst_7 = arith.constant 1.000000e+00 : f32
    %13 = vector.broadcast %cst_7 : f32 to vector<8x128xf32>
    %14 = arith.addf %13, %12 : vector<8x128xf32>
    %15 = arith.divf %13, %14 : vector<8x128xf32>
    %16 = arith.mulf %8, %15 : vector<8x128xf32>
    %c0_8 = arith.constant 0 : index
    %c0_9 = arith.constant 0 : index
    %17 = vector.load %arg18[%c0_8, %c0_9] : memref<8x32xf32, #tpu.memory_space<vmem>>, vector<8x32xf32>
    %18 = arith.truncf %16 : vector<8x128xf32> to vector<8x128xbf16>
    %c0_10 = arith.constant 0 : index
    %c0_11 = arith.constant 0 : index
    %19 = vector.load %arg13[%c0_10, %c0_11] : memref<128x32xbf16, #tpu.memory_space<vmem>>, vector<128x32xbf16>
    %cst_12 = arith.constant dense<0.000000e+00> : vector<8x32xf32>
    %20 = tpu.matmul %18, %19, %cst_12 {dimension_numbers = #tpu.dot_dimension_numbers<[1], [0], [0], [1], [0, 0, 1, 1], [], []>} : vector<8x128xbf16>, vector<128x32xbf16>, vector<8x32xf32> -> vector<8x32xf32>
    %21 = arith.addf %17, %20 : vector<8x32xf32>
    %c0_13 = arith.constant 0 : index
    %c0_14 = arith.constant 0 : index
    %22 = vector.load %arg18[%c0_13, %c0_14] : memref<8x32xf32, #tpu.memory_space<vmem>>, vector<8x32xf32>
    tpu.vector_store %arg18[%c0_13, %c0_14], %21 {strides = array<i32>} : memref<8x32xf32, #tpu.memory_space<vmem>>, vector<8x32xf32>,
    %c0_i32_15 = arith.constant 0 : i32
    %23 = arith.cmpi eq, %arg1, %c0_i32_15 : i32
    %24 = arith.extui %23 : i1 to i32
    %c0_i32_16 = arith.constant 0 : i32
    %25 = arith.cmpi ne, %24, %c0_i32_16 : i32
    scf.if %25 {
      %c0_17 = arith.constant 0 : index
      %c0_18 = arith.constant 0 : index
      %26 = vector.load %arg18[%c0_17, %c0_18] : memref<8x32xf32, #tpu.memory_space<vmem>>, vector<8x32xf32>
      %c0_19 = arith.constant 0 : index
      %c0_20 = arith.constant 0 : index
      %c0_21 = arith.constant 0 : index
      %27 = vector.load %arg15[%c0_19, %c0_20, %c0_21] : memref<1x8x32xf32, #tpu.memory_space<vmem>>, vector<1x8x32xf32>
      %28 = vector.shape_cast %27 : vector<1x8x32xf32> to vector<8x32xf32>
      %29 = vector.shape_cast %26 : vector<8x32xf32> to vector<1x8x32xf32>
      tpu.vector_store %arg15[%c0_19, %c0_20, %c0_21], %29 {strides = array<i32>} : memref<1x8x32xf32, #tpu.memory_space<vmem>>, vector<1x8x32xf32>,
    } else {
    }
    return
  }
  func.func @transform_0(%arg0: i32, %arg1: i32) -> (i32, i32, i32) {
    %c0_i32 = arith.constant 0 : i32
    %c0_i32_0 = arith.constant 0 : i32
    %c0_i32_1 = arith.constant 0 : i32
    return %arg0, %c0_i32, %c0_i32_0 : i32, i32, i32
  }
  func.func @transform_1(%arg0: i32, %arg1: i32) -> (i32, i32) {
    %c0_i32 = arith.constant 0 : i32
    %c0_i32_0 = arith.constant 0 : i32
    %c0_i32_1 = arith.constant 0 : i32
    return %c0_i32, %c0_i32_0 : i32, i32
  }
  func.func @transform_2(%arg0: i32, %arg1: i32) -> (i32, i32) {
    %c0_i32 = arith.constant 0 : i32
    %c0_i32_0 = arith.constant 0 : i32
    %c0_i32_1 = arith.constant 0 : i32
    return %c0_i32, %c0_i32_0 : i32, i32
  }
  func.func @transform_3(%arg0: i32, %arg1: i32) -> (i32, i32) {
    %c0_i32 = arith.constant 0 : i32
    %c0_i32_0 = arith.constant 0 : i32
    %c0_i32_1 = arith.constant 0 : i32
    return %c0_i32, %c0_i32_0 : i32, i32
  }
  func.func @transform_4(%arg0: i32, %arg1: i32) -> (i32, i32) {
    %c0_i32 = arith.constant 0 : i32
    %c0_i32_0 = arith.constant 0 : i32
    %c0_i32_1 = arith.constant 0 : i32
    return %c0_i32, %c0_i32_0 : i32, i32
  }
  func.func @transform_5(%arg0: i32, %arg1: i32) -> (i32, i32) {
    %c0_i32 = arith.constant 0 : i32
    %c0_i32_0 = arith.constant 0 : i32
    %c0_i32_1 = arith.constant 0 : i32
    return %c0_i32, %c0_i32_0 : i32, i32
  }
  func.func @transform_6(%arg0: i32, %arg1: i32) -> (i32, i32) {
    %c0_i32 = arith.constant 0 : i32
    %c0_i32_0 = arith.constant 0 : i32
    %c0_i32_1 = arith.constant 0 : i32
    return %c0_i32, %c0_i32_0 : i32, i32
  }
  func.func @transform_7(%arg0: i32, %arg1: i32) -> (i32, i32) {
    %c0_i32 = arith.constant 0 : i32
    %c0_i32_0 = arith.constant 0 : i32
    %c0_i32_1 = arith.constant 0 : i32
    return %c0_i32, %c0_i32_0 : i32, i32
  }
  func.func @transform_8(%arg0: i32, %arg1: i32) -> (i32, i32) {
    %c0_i32 = arith.constant 0 : i32
    %c0_i32_0 = arith.constant 0 : i32
    %c0_i32_1 = arith.constant 0 : i32
    return %c0_i32, %c0_i32_0 : i32, i32
  }
  func.func @transform_9(%arg0: i32, %arg1: i32) -> (i32, i32) {
    %c0_i32 = arith.constant 0 : i32
    %c0_i32_0 = arith.constant 0 : i32
    return %c0_i32, %arg1 : i32, i32
  }
  func.func @transform_10(%arg0: i32, %arg1: i32) -> (i32, i32) {
    %c0_i32 = arith.constant 0 : i32
    %c0_i32_0 = arith.constant 0 : i32
    return %c0_i32, %arg1 : i32, i32
  }
  func.func @transform_11(%arg0: i32, %arg1: i32) -> (i32, i32) {
    %c0_i32 = arith.constant 0 : i32
    %c0_i32_0 = arith.constant 0 : i32
    return %arg1, %c0_i32 : i32, i32
  }
  func.func @transform_12(%arg0: i32, %arg1: i32) -> (i32, i32) {
    %c0_i32 = arith.constant 0 : i32
    %c0_i32_0 = arith.constant 0 : i32
    %c0_i32_1 = arith.constant 0 : i32
    return %c0_i32, %c0_i32_0 : i32, i32
  }
  func.func @transform_13(%arg0: i32, %arg1: i32) -> (i32, i32, i32) {
    %c0_i32 = arith.constant 0 : i32
    %c0_i32_0 = arith.constant 0 : i32
    %c0_i32_1 = arith.constant 0 : i32
    return %arg0, %c0_i32, %c0_i32_0 : i32, i32, i32
  }
}

</mosaic_0001>

<bundles_post_ra>
// kernel: tpu_custom_call.1
= control target key start
LH: loop header
LB: loop body
LE: loop exit
PB: predicated region body
PF: predicated region fallthrough
CT: control target
= control target key end

     0   :  { %s2216_s0 = inlined_call_operand.vmem [shape: f32[2,8,32], index: 0, kind: input, shape index: {}]   ;;  %s2217_s1 = inlined_call_operand.vmem [shape: f32[1,32], index: 1, kind: input, shape index: {}]   ;;  %s2218_s2 = inlined_call_operand.vmem [shape: f32[1,32], index: 2, kind: input, shape index: {}]   ;;  %s2219_s3 = inlined_call_operand.vmem [shape: bf16[32,96], index: 3, kind: input, shape index: {}]   ;;  %s2220_s4 = inlined_call_operand.vmem [shape: f32[1,96], index: 4, kind: input, shape index: {}]   ;;  %s2221_s5 = inlined_call_operand.vmem [shape: bf16[32,32], index: 5, kind: input, shape index: {}]   ;;  %s2222_s6 = inlined_call_operand.vmem [shape: f32[1,32], index: 6, kind: input, shape index: {}]   ;;  %s2223_s7 = inlined_call_operand.vmem [shape: f32[1,32], index: 7, kind: input, shape index: {}]   ;;  %s2224_s8 = inlined_call_operand.vmem [shape: f32[1,32], index: 8, kind: input, shape index: {}]   ;;  %s2225_s9 = inlined_call_operand.vmem [shape: bf16[32,128], index: 9, kind: input, shape index: {}]   ;;  %s2226_s10 = inlined_call_operand.vmem [shape: f32[1,128], index: 10, kind: input, shape index: {}]   ;;  %s2227_s11 = inlined_call_operand.vmem [shape: bf16[128,32], index: 11, kind: input, shape index: {}]   ;;  %s2228_s12 = inlined_call_operand.vmem [shape: f32[1,32], index: 12, kind: input, shape index: {}]   ;;  %s2229_s13 = inlined_call_operand.hbm [shape: f32[2,8,32], index: 13, kind: output, shape index: {}]  }
   0x1   :  { %2230 = sst [smem:[#allocation8_spill]] %s2216_s0 }
   0x2   :  { %2231 = sst [smem:[#allocation9_spill]] %s2217_s1 }
   0x3   :  { %2232 = sst [smem:[#allocation10_spill]] %s2218_s2 }
   0x4   :  { %18 = vsyncpa [#allocation6], 0 }
   0x5   :  { %20 = vsyncpa [#allocation6 + $0x1], 0  ;;  %s1937_s25 = smov 0   ;;  %s1939_s26 = smov 0  }
   0x6   :  { %s1941_s27 = smov 0   ;;  %s1943_s28 = smov 0  }
   0x7   :  { %s1945_s29 = smov 0   ;;  %s1947_s30 = smov 0  }
   0x8 LB: > { %s1487_s14 = sadd.s32 4294967295, %s1848_s30   ;;  %s1488_s15 = sadd.s32 4294967294, %s1848_s30   ;;  %s1848_s30 = sphi %s1947_s30, %s26_s30   ;;  %s1844_s29 = sphi %s1945_s29, %s2242_s29   ;;  %s1840_s28 = sphi %s1943_s28, %s2241_s28   ;;  %s1836_s27 = sphi %s1941_s27, %s2240_s27   ;;  %s1832_s26 = sphi %s1939_s26, %s2239_s26   ;;  %s1828_s25 = sphi %s1937_s25, %s2238_s25  }
   0x9   : > { %s38_s16 = sadd.s32 1, %s1844_s29  ;;  %s338_s17 = sadd.s32 1, %s1836_s27 }
   0xa   : > { %p40_p0 = scmp.ge.s32.totalorder %s38_s16, 2  ;;  %p348_p1 = scmp.ne.s32.totalorder %s1836_s27, %s1832_s26 }
   0xb   : > { %p349_p2 = scmp.eq.s32.totalorder %s1487_s14, 1  ;;  %p354_p3 = scmp.ne.s32.totalorder %s1832_s26, %s1828_s25 }
   0xc   : > { %s2244_s16 = smov (%p40_p0, %s38_s16), 0  ;;  %p355_p5 = scmp.eq.s32.totalorder %s1488_s15, 1 }
   0xd   : > { %p1977_p4 = por %p349_p2, %p348_p1  ;;  %s335_s19 = ssub.s32 %s1844_s29, %s2244_s16 }
   0xe   : > { %p1494_p6 = scmp.ge.s32.totalorder %s1848_s30, 1  ;;  %p336_p7 = scmp.eq.s32.totalorder %s335_s19, 0 }
   0xf   : > { %p1984_p8 = por %p355_p5, %p354_p3  ;;  %p429_p9 = scmp.lt.s32.totalorder %s1848_s30, 3 }
  0x10   : > { %s1990_s21 = scalar_select %p336_p7, %s1836_s27, %s338_s17  }
  0x11   : > { %p430_p10 = pnand %p1494_p6, %p429_p9 }
  0x12   : > { %p484_p11 = scmp.lt.s32.totalorder (!%p430_p10), %s1840_s28, 1  ;;  %vm509_vm0 = vcmask (!%p430_p10), 261120   ;;  %s2235_s0 = sld [smem:[#allocation8_spill]] (!%p430_p10)  ;;  %v1732_v7 = vld [vmem:[%s2219_s3] sm:$0xff] (!%p430_p10)   ;;  %v1850_v8 = vmov (!%p430_p10), 0.0   ;;  %vm1851_vm1 = vmmov (!%p430_p10), 0  }
  0x13   : > { %433 = sbr.rel (%p430_p10) target bundleno = 2479 (0x9af), region = 72  ;;  %1569 = vmatprep.subr.bf16.mxu0 (!%p430_p10), %v1850_v8  ;;  %1573 = vmatprep.mubr.msk.bf16.mxu0 (!%p430_p10), %vm1851_vm1, %v1850_v8  ;;  %v1733_v9 = vld [vmem:[%s2219_s3 + $0x8] sm:$0xff] (!%p430_p10)   ;;  %s2236_s1 = sld [smem:[#allocation9_spill]] (!%p430_p10)  ;;  %v1499_v20 = vld [vmem:[%s2220_s4] ss:$0 sm:$0xff] (!%p430_p10)  ;;  %vm609_vm2 = vcmask (!%p430_p10), 64512  }
  0x14   : > { %1570 = vmatpush3.bf16.msra.mxu0 (!%p430_p10), %v1732_v7  ;;  %1589 = vmatprep.subr.bf16.mxu1 (!%p430_p10), %v1850_v8  ;;  %s2237_s2 = sld [smem:[#allocation10_spill]] (!%p430_p10)  ;;  %s1853_s24 = smov (!%p430_p10), 96   ;;  %vm671_vm3 = vcmask (!%p430_p10), 1043456   ;;  %vm1060_vm4 = vcmask (!%p430_p10), 130048   ;;  %vm1062_vm5 = vcmask (!%p430_p10), 195584   ;;  %vm1164_vm6 = vcmask (!%p430_p10), 257024  }
  0x15   : > { %1571 = vmatprep.subr.bf16.mxu0 (!%p430_p10), %v1850_v8  ;;  %1591 = vmatprep.mubr.msk.bf16.mxu1 (!%p430_p10), %vm1851_vm1, %v1850_v8  ;;  %s1854_s14 = smov (!%p430_p10), 88   ;;  %s1856_s17 = smov (!%p430_p10), 112  }
  0x16   : > { %s1857_s19 = smov (!%p430_p10), 72  }
  0x18   : > { %1572 = vmatpush3.bf16.msra.mxu0 (!%p430_p10), %v1733_v9 }
  0x19   : > { %1577 = vmatprep.subr.bf16.mxu0 (!%p430_p10), %v1850_v8  ;;  %v1497_v14 = vld [vmem:[%s2236_s1] ss:$0 sm:$0xff] (!%p430_p10) }
  0x1a   : > { %s485_s22 = scalar_select %p484_p11, %s1840_s28, 1  ;;  %v1498_v16 = vld [vmem:[%s2237_s2] ss:$0 sm:$0xff] }
  0x1c   : > { %s1496_s23 = sshll.u32 %s485_s22, 3  ;;  %s1858_s22 = smov 104  }
  0x1d   : > { %s487_s15 = scalar_lea.vmem %s2235_s0, %s1496_s23  ;;  %s1852_s23 = smov 120  }
  0x1e   : > { %v1997_v0 = vld [vmem:[%s487_s15] sm:$0xff]  ;;  %s1855_s15 = smov 80  }
  0x1f   : > { %v510_v1 = vsel %vm509_vm0, %v1997_v0, 0.0 }
  0x20   : > { %511 = vadd.xlane.f32.xlu0 %v510_v1 }
  0xad   : > { %v512_v2 = vpop.xlane.xlu0 %511 }
  0xae   : > { %v514_v3 = vmul.f32 0.03125, %v512_v2 }
  0xb0   : > { %v515_v4 = vsub.f32 %v1997_v0, %v514_v3 }
  0xb2   : > { %v516_v5 = vmul.f32 %v515_v4, %v515_v4 }
  0xb4   : > { %v517_v6 = vsel %vm509_vm0, %v516_v5, 0.0 }
  0xb5   : > { %518 = vadd.xlane.f32.xlu0 %v517_v6 }
 0x142   : > { %v519_v10 = vpop.xlane.xlu0 %518 }
 0x143   : > { %v520_v11 = vmul.f32 0.03125, %v519_v10 }
 0x145   : > { %v521_v12 = vadd.f32 1e-05, %v520_v11 }
 0x147   : > { %1746 = vrsqrt.f32 %v521_v12 }
 0x151   : > { %v1747_v13 = vpop.eup %1746 }
 0x152   : > { %v523_v15 = vmul.f32 %v1747_v13, %v515_v4 }
 0x154   : > { %v530_v17 = vmul.f32 %v1497_v14, %v523_v15 }
 0x156   : > { %v537_v18 = vadd.f32 %v1498_v16, %v530_v17 }
 0x158   : > { %v538_v19 = vpack.c.bf16 %v537_v18, %v537_v18 }
 0x15a   : > { %1574 = vmatmul.mubr.msk.bf16.vlgmr.msra.gmra.mrb[0].mxu0 %vm509_vm0, %v538_v19 }
 0x15b   : > { %1579 = vmatprep.mubr.msk.bf16.mxu0 %vm1851_vm1, %v1850_v8 }
 0x22d   : > { %v599_v21 = vpop.f32.mrb[0].mxu0 }
 0x22e   : > { %v600_v22 = vadd.f32 %v1499_v20, %v599_v21  ;;  %v1575_v23 = vpop.f32.mrb[1].mxu0 }
 0x22f   : > { %v602_v24 = vpop.f32.mrb[2].mxu0 }
 0x230   : > { %v2029_v25 = vpack.c.bf16 %v600_v22, %v600_v22  ;;  %v1576_v26 = vpop.f32.mrb[3].mxu0 }
 0x232   : > { %717 = vrot.lane.b32.xlu0 %v2029_v25, %s1852_s23  ;;  %607 = vrot.lane.b32.xlu1 %v2029_v25, %s1853_s24  ;;  %s1859_s23 = smov 64   ;;  %s1860_s24 = smov 56  }
 0x236   : > { %719 = vrot.lane.b32.xlu1 %v2029_v25, %s1854_s14  ;;  %s1861_s14 = smov 48  }
 0x23a   : > { %829 = vrot.lane.b32.xlu1 %v2029_v25, %s1855_s15  ;;  %s1862_s15 = smov 40  }
 0x23e   : > { %827 = vrot.lane.b32.xlu1 %v2029_v25, %s1856_s17  ;;  %s1863_s17 = smov 8  }
 0x242   : > { %939 = vrot.lane.b32.xlu1 %v2029_v25, %s1857_s19  ;;  %s481_s19 = sand.u32 1, %s1832_s26  }
 0x243   : > { %s1495_s0 = sshll.u32 %s481_s19, 3  ;;  %s1365_s1 = scalar_lea.sflag [#allocation6], %s481_s19 }
 0x246   : > { %937 = vrot.lane.b32.xlu1 %v2029_v25, %s1858_s22  ;;  %s1532_s22 = sshll.u32 %s1840_s28, 7  ;;  %s1866_s28 = smov [#allocation5]  }
 0x2a4   : > { %v608_v27 = vpop.permute.xlu1 %607  ;;  %v718_v32 = vpop.permute.xlu0 %717 }
 0x2a5   : > { %v614_v28 = vsel %vm609_vm2, %v608_v27, 0 }
 0x2a6   : > { %1578 = vmatpush3.bf16.xpose.msra.mxu0 %v614_v28 }
 0x2a7   : > { %1583 = vmatprep.subr.bf16.mxu0 %v1850_v8 }
 0x2a8   : > { %v720_v29 = vpop.permute.xlu1 %719 }
 0x2a9   : > { %v725_v30 = vsel %vm609_vm2, %v720_v29, 0 }
 0x2aa   : > { %1590 = vmatpush3.bf16.xpose.msra.mxu1 %v725_v30 }
 0x2ab   : > { %1601 = vmatprep.subr.bf16.mxu1 %v1850_v8 }
 0x2ac   : > { %v830_v31 = vpop.permute.xlu1 %829 }
 0x2ad   : > { %1580 = vmatmul.mubr.msk.bf16.vlgmr.msra.gmra.mrb[4].mxu0 %vm609_vm2, %v2029_v25  ;;  %v835_v34 = vsel %vm609_vm2, %v830_v31, 0 }
 0x2ae   : > { %1585 = vmatprep.mubr.msk.bf16.mxu0 %vm1851_vm1, %v1850_v8 }
 0x2b0   : > { %v828_v33 = vpop.permute.xlu1 %827 }
 0x2b1   : > { %1592 = vmatmul.mubr.msk.bf16.vlgmr.msra.gmra.mrb[0].mxu1 %vm609_vm2, %v718_v32 }
 0x2b2   : > { %1602 = vmatpush3.bf16.xpose.msra.mxu1 %v835_v34  ;;  %1603 = vmatprep.mubr.msk.bf16.mxu1 %vm1851_vm1, %v1850_v8 }
 0x2b3   : > { %1613 = vmatprep.subr.bf16.mxu1 %v1850_v8 }
 0x2b4   : > { %v940_v35 = vpop.permute.xlu1 %939 }
 0x2b5   : > { %v945_v36 = vsel %vm609_vm2, %v940_v35, 0 }
 0x2b8   : > { %v938_v37 = vpop.permute.xlu1 %937 }
 0x2b9   : > { %1604 = vmatmul.mubr.msk.bf16.vlgmr.msra.gmra.mrb[4].mxu1 %vm609_vm2, %v828_v33 }
 0x2ba   : > { %1614 = vmatpush3.bf16.xpose.msra.mxu1 %v945_v36  ;;  %1615 = vmatprep.mubr.msk.bf16.mxu1 %vm1851_vm1, %v1850_v8 }
 0x2bb   : > { %1625 = vmatprep.subr.bf16.mxu1 %v1850_v8 }
 0x2c1   : > { %1616 = vmatmul.mubr.msk.bf16.vlgmr.msra.gmra.mrb[8].mxu1 %vm609_vm2, %v938_v37 }
 0x2c2   : > { %1629 = vmatprep.mubr.msk.bf16.mxu1 %vm1851_vm1, %v1850_v8 }
 0x380   : > { %v650_v38 = vpop.f32.mrb[4].mxu0 }
 0x381   : > { %v1581_v39 = vpop.f32.mrb[5].mxu0  ;;  %v656_v40 = vsel %vm609_vm2, %v650_v38, -inf }
 0x382   : > { %657 = vmax.xlane.f32.xlu1 %v656_v40  ;;  %v653_v41 = vpop.f32.mrb[6].mxu0 }
 0x383   : > { %v1582_v42 = vpop.f32.mrb[7].mxu0  ;;  %v1734_v41 = vld [vmem:[%s2221_s5] sm:$0xff]  }
 0x384   : > { %v761_v43 = vpop.f32.mrb[0].mxu1  ;;  %1626 = vmatpush3.bf16.msra.mxu1 %v1734_v41 }
 0x385   : > { %v1593_v44 = vpop.f32.mrb[1].mxu1  ;;  %v767_v45 = vsel %vm609_vm2, %v761_v43, -inf  ;;  %1627 = vmatprep.subr.bf16.mxu1 %v1850_v8 }
 0x386   : > { %768 = vmax.xlane.f32.xlu0 %v767_v45  ;;  %v764_v46 = vpop.f32.mrb[2].mxu1 }
 0x387   : > { %v1594_v47 = vpop.f32.mrb[3].mxu1  ;;  %v1735_v46 = vld [vmem:[%s2221_s5 + $0x8] sm:$0xff]  }
 0x388   : > { %1628 = vmatpush3.bf16.msra.mxu1 %v1735_v46 }
 0x389   : > { %1641 = vmatprep.subr.bf16.mxu1 %v1850_v8 }
 0x38c   : > { %v871_v48 = vpop.f32.mrb[4].mxu1 }
 0x38d   : > { %v1605_v49 = vpop.f32.mrb[5].mxu1  ;;  %v877_v57 = vsel %vm609_vm2, %v871_v48, -inf }
 0x38e   : > { %v874_v50 = vpop.f32.mrb[6].mxu1 }
 0x38f   : > { %v1606_v51 = vpop.f32.mrb[7].mxu1 }
 0x393   : > { %666 = vrot.lane.b32.xlu1 %v2029_v25, %s1859_s23  ;;  %s483_s23 = scalar_lea.vmem [#allocation5], %s1495_s0  ;;  %s1774_s0 = sshll.u32 %s1866_s28, 4  ;;  %s1775_s0 = int_to_ptr.vmem [resolvable:$false] %s1774_s0 }
 0x394   : > { %v981_v52 = vpop.f32.mrb[8].mxu1 }
 0x395   : > { %v1617_v53 = vpop.f32.mrb[9].mxu1  ;;  %v987_v54 = vsel %vm609_vm2, %v981_v52, -inf }
 0x396   : > { %988 = vmax.xlane.f32.xlu0 %v987_v54  ;;  %v984_v55 = vpop.f32.mrb[10].mxu1 }
 0x397   : > { %v1618_v56 = vpop.f32.mrb[11].mxu1 }
 0x3ac   : > { %777 = vrot.lane.b32.xlu0 %v2029_v25, %s1860_s24  ;;  %s1378_s24 = sshll.u32 %s483_s23, 4  ;;  %s2170_s24 = int_to_ptr.vmem [resolvable:$true] %s1378_s24 }
 0x3ad   : > { %s1770_s2 = scalar_lea.vmem %s2170_s24, 128  ;;  %p1777_p1 = scmp.lt.s32.totalorder %s2170_s24, %s1775_s0 }
 0x3ae   : > { %p1771_p12 = scmp.ne.s32.totalorder %s2170_s24, %s1770_s2 }
 0x3b0   : > { %p1772_p13 = pnand %p1771_p12, %p1977_p4 }
 0x3b2   : > { %p1773_p0 = pneg %p1772_p13 }
 0x3b7   : > { %878 = vmax.xlane.f32.xlu1 %v877_v57 }
 0x3c8   : > { %887 = vrot.lane.b32.xlu1 %v2029_v25, %s1861_s14  ;;  %s1864_s14 = smov 16  }
 0x3cc   : > { %997 = vrot.lane.b32.xlu1 %v2029_v25, %s1862_s15  ;;  %s1865_s15 = smov 24  }
 0x40f   : > { %v658_v58 = vpop.xlane.xlu1 %657 }
 0x410   : > { %v659_v59 = vsub.f32 %v650_v38, %v658_v58 }
 0x412   : > { %v660_v60 = vmul.f32 1.442695, %v659_v59 }
 0x413   : > { %v769_v61 = vpop.xlane.xlu0 %768  ;;  %v667_v62 = vpop.permute.xlu1 %666 }
 0x414   : > { %1748 = vpow2.f32 %v660_v60  ;;  %v770_v63 = vsub.f32 %v761_v43, %v769_v61  ;;  %v673_v1 = vsel %vm671_vm3, %v667_v62, 0 }
 0x415   : > { %1584 = vmatpush3.bf16.msra.mxu0 %v673_v1 }
 0x416   : > { %v771_v2 = vmul.f32 1.442695, %v770_v63  ;;  %1595 = vmatprep.subr.bf16.mxu0 %v1850_v8 }
 0x418   : > { %1750 = vpow2.f32 %v771_v2 }
 0x41e   : > { %v1749_v3 = vpop.eup %1748 }
 0x41f   : > { %v665_v4 = vpack.c.bf16 %v1749_v3, %v1749_v3  ;;  %v662_v16 = vsel %vm609_vm2, %v1749_v3, 0.0  ;;  %v1511_v3 = vld [vmem:[%s2222_s6] ss:$0 sm:$0xff] }
 0x421   : > { %1586 = vmatmul.mubr.msk.bf16.vlgmr.msra.gmra.mrb[8].mxu0 %vm609_vm2, %v665_v4 }
 0x422   : > { %v1751_v5 = vpop.eup %1750  ;;  %1597 = vmatprep.mubr.msk.bf16.mxu0 %vm1851_vm1, %v1850_v8 }
 0x423   : > { %v989_v6 = vpop.xlane.xlu0 %988  ;;  %v773_v7 = vsel %vm609_vm2, %v1751_v5, 0.0  ;;  %v776_v13 = vpack.c.bf16 %v1751_v5, %v1751_v5 }
 0x424   : > { %v990_v9 = vsub.f32 %v981_v52, %v989_v6  ;;  %774 = vadd.xlane.f32.xlu0 %v773_v7  ;;  %v1517_v7 = vld [vmem:[%s2228_s12] ss:$0 sm:$0xff] }
 0x426   : > { %v991_v10 = vmul.f32 1.442695, %v990_v9 }
 0x427   : > { %v778_v11 = vpop.permute.xlu0 %777 }
 0x428   : > { %1752 = vpow2.f32 %v991_v10  ;;  %v783_v12 = vsel %vm671_vm3, %v778_v11, 0 }
 0x429   : > { %1596 = vmatpush3.bf16.msra.mxu0 %v783_v12 }
 0x42a   : > { %1607 = vmatprep.subr.bf16.mxu0 %v1850_v8 }
 0x42c   : > { %1598 = vmatmul.mubr.msk.bf16.vlgmr.msra.gmra.mrb[12].mxu0 %vm609_vm2, %v776_v13 }
 0x42d   : > { %1609 = vmatprep.mubr.msk.bf16.mxu0 %vm1851_vm1, %v1850_v8 }
 0x432   : > { %v1753_v14 = vpop.eup %1752 }
 0x433   : > { %v993_v15 = vsel %vm609_vm2, %v1753_v14, 0.0  ;;  %v996_v27 = vpack.c.bf16 %v1753_v14, %v1753_v14 }
 0x434   : > { %994 = vadd.xlane.f32.xlu0 %v993_v15 }
 0x438   : > { %663 = vadd.xlane.f32.xlu0 %v662_v16 }
 0x444   : > { %v879_v17 = vpop.xlane.xlu1 %878 }
 0x445   : > { %v880_v18 = vsub.f32 %v871_v48, %v879_v17 }
 0x447   : > { %v881_v19 = vmul.f32 1.442695, %v880_v18 }
 0x448   : > { %v888_v20 = vpop.permute.xlu1 %887 }
 0x449   : > { %1754 = vpow2.f32 %v881_v19  ;;  %v893_v21 = vsel %vm671_vm3, %v888_v20, 0  ;;  %v1736_v19 = vld [vmem:[%s2225_s9] sm:$0xff]  }
 0x44a   : > { %1608 = vmatpush3.bf16.msra.mxu0 %v893_v21 }
 0x44b   : > { %1619 = vmatprep.subr.bf16.mxu0 %v1850_v8 }
 0x44c   : > { %v998_v23 = vpop.permute.xlu1 %997 }
 0x44d   : > { %v1003_v26 = vsel %vm671_vm3, %v998_v23, 0 }
 0x453   : > { %v1755_v22 = vpop.eup %1754 }
 0x454   : > { %v883_v24 = vsel %vm609_vm2, %v1755_v22, 0.0  ;;  %v886_v25 = vpack.c.bf16 %v1755_v22, %v1755_v22 }
 0x455   : > { %884 = vadd.xlane.f32.xlu1 %v883_v24  ;;  %v1515_v24 = vld [vmem:[%s2223_s7] ss:$0 sm:$0xff] }
 0x456   : > { %1610 = vmatmul.mubr.msk.bf16.vlgmr.msra.gmra.mrb[16].mxu0 %vm609_vm2, %v886_v25 }
 0x457   : > { %1620 = vmatpush3.bf16.msra.mxu0 %v1003_v26  ;;  %1621 = vmatprep.mubr.msk.bf16.mxu0 %vm1851_vm1, %v1850_v8  ;;  %v1516_v26 = vld [vmem:[%s2224_s8] ss:$0 sm:$0xff] }
 0x458   : > { %1633 = vmatprep.subr.bf16.mxu0 %v1850_v8 }
 0x45e   : > { %1622 = vmatmul.mubr.msk.bf16.vlgmr.msra.gmra.mrb[20].mxu0 %vm609_vm2, %v996_v27 }
 0x45f   : > { %1637 = vmatprep.mubr.msk.bf16.mxu0 %vm1851_vm1, %v1850_v8  ;;  %1634 = vmatpush3.bf16.msra.mxu0 %v1736_v19 }
 0x460   : > { %1635 = vmatprep.subr.bf16.mxu0 %v1850_v8 }
 0x4b1   : > { %v775_v28 = vpop.xlane.xlu0 %774 }
 0x4b2   : > { %1756 = vrcp.f32 %v775_v28 }
 0x4bc   : > { %v1757_v33 = vpop.eup %1756 }
 0x4c1   : > { %v995_v40 = vpop.xlane.xlu0 %994 }
 0x4c5   : > { %v664_v55 = vpop.xlane.xlu0 %663 }
 0x4e2   : > { %v885_v39 = vpop.xlane.xlu1 %884 }
 0x4e3   : > { %1758 = vrcp.f32 %v885_v39  ;;  %v1518_v39 = vld [vmem:[%s2226_s10] ss:$0 sm:$0xff] }
 0x4e4   : > { %1760 = vrcp.f32 %v995_v40 }
 0x4e5   : > { %1762 = vrcp.f32 %v664_v55 }
 0x4ed   : > { %v1759_v42 = vpop.eup %1758 }
 0x4ee   : > { %v1761_v49 = vpop.eup %1760 }
 0x4ef   : > { %v1763_v56 = vpop.eup %1762 }
 0x4f4   : > { %v709_v29 = vpop.f32.mrb[8].mxu0 }
 0x4f5   : > { %v1587_v30 = vpop.f32.mrb[9].mxu0  ;;  %v716_v58 = vmul.f32 %v1763_v56, %v709_v29 }
 0x4f6   : > { %v712_v31 = vpop.f32.mrb[10].mxu0 }
 0x4f7   : > { %v1588_v32 = vpop.f32.mrb[11].mxu0  ;;  %v1738_v31 = vld [vmem:[%s2227_s11] sm:$0xff]  }
 0x4f8   : > { %v1739_v32 = vld [vmem:[%s2227_s11 + $0x8] sm:$0xff]  }
 0x4ff   : > { %v819_v34 = vpop.f32.mrb[12].mxu0 }
 0x500   : > { %v826_v35 = vmul.f32 %v1757_v33, %v819_v34  ;;  %v1599_v36 = vpop.f32.mrb[13].mxu0  ;;  %v1740_v33 = vld [vmem:[%s2227_s11 + $0x10] sm:$0xff]   ;;  %v1741_v34 = vld [vmem:[%s2227_s11 + $0x18] sm:$0xff]  }
 0x501   : > { %v822_v37 = vpop.f32.mrb[14].mxu0  ;;  %v1743_v36 = vld [vmem:[%s2227_s11 + $0x28] sm:$0xff]  }
 0x502   : > { %1048 = vrot.lane.b32.xlu1 %v826_v35, %s1863_s17  ;;  %v1600_v38 = vpop.f32.mrb[15].mxu0  ;;  %v1742_v35 = vld [vmem:[%s2227_s11 + $0x20] sm:$0xff]   ;;  %v1744_v37 = vld [vmem:[%s2227_s11 + $0x30] sm:$0xff]   ;;  %s2168_s17 = scalar_lea.hbm %s2229_s13, %s1532_s22 }
 0x503   : > { %v1745_v38 = vld [vmem:[%s2227_s11 + $0x38] sm:$0xff]  }
 0x529   : > { %v929_v43 = vpop.f32.mrb[16].mxu0 }
 0x52a   : > { %v936_v44 = vmul.f32 %v1759_v42, %v929_v43  ;;  %v1611_v45 = vpop.f32.mrb[17].mxu0 }
 0x52b   : > { %v932_v47 = vpop.f32.mrb[18].mxu0 }
 0x52c   : > { %1052 = vrot.lane.b32.xlu0 %v936_v44, %s1864_s14  ;;  %v1612_v48 = vpop.f32.mrb[19].mxu0  ;;  %s1776_s14 = scalar_lea.vmem %s1775_s0, 256 }
 0x52d   : > { %p1778_p2 = scmp.lt.s32.totalorder %s1776_s14, %s1770_s2 }
 0x52f   : > { %p1779_p3 = por %p1778_p2, %p1777_p1 }
 0x531   : > { %v1039_v50 = vpop.f32.mrb[20].mxu0  ;;  %p1780_p5 = pnand %p1779_p3, %p1773_p0 }
 0x532   : > { %v1046_v51 = vmul.f32 %v1761_v49, %v1039_v50  ;;  %v1623_v52 = vpop.f32.mrb[21].mxu0 }
 0x533   : > { %v1042_v53 = vpop.f32.mrb[22].mxu0 }
 0x534   : > { %1056 = vrot.lane.b32.xlu1 %v1046_v51, %s1865_s15  ;;  %v1624_v54 = vpop.f32.mrb[23].mxu0 }
 0x574   : > { %v1049_v57 = vpop.permute.xlu1 %1048 }
 0x575   : > { %v1059_v60 = vsel %vm609_vm2, %v716_v58, %v1049_v57 }
 0x59e   : > { %v1053_v59 = vpop.permute.xlu0 %1052 }
 0x59f   : > { %v1061_v61 = vsel %vm1060_vm4, %v1059_v60, %v1053_v59 }
 0x5a6   : > { %v1057_v62 = vpop.permute.xlu1 %1056 }
 0x5a7   : > { %v1063_v63 = vsel %vm1062_vm5, %v1061_v61, %v1057_v62 }
 0x5a8   : > { %1064 = vst.msk [vmem:[#allocation2] sm:$0xff] %vm509_vm0, %v1063_v63 }
 0x5af   : > { %v1065_v1 = vld [vmem:[#allocation2] sm:$0xff] }
 0x5b0   : > { %v1066_v2 = vpack.c.bf16 %v1065_v1, %v1065_v1 }
 0x5b2   : > { %1630 = vmatmul.mubr.msk.bf16.vlgmr.msra.gmra.mrb[12].mxu1 %vm509_vm0, %v1066_v2 }
 0x5b3   : > { %1657 = vmatprep.mubr.msk.bf16.mxu1 %vm1851_vm1, %v1850_v8  ;;  %1642 = vmatpush3.bf16.msra.mxu1 %v1738_v31 }
 0x5b4   : > { %1643 = vmatprep.subr.bf16.mxu1 %v1850_v8 }
 0x5b7   : > { %1644 = vmatpush3.bf16.msra.mxu1 %v1739_v32 }
 0x5b8   : > { %1645 = vmatprep.subr.bf16.mxu1 %v1850_v8 }
 0x5bb   : > { %1646 = vmatpush3.bf16.msra.mxu1 %v1740_v33 }
 0x5bc   : > { %1647 = vmatprep.subr.bf16.mxu1 %v1850_v8 }
 0x5bf   : > { %1648 = vmatpush3.bf16.msra.mxu1 %v1741_v34 }
 0x5c0   : > { %1649 = vmatprep.subr.bf16.mxu1 %v1850_v8 }
 0x5c3   : > { %1650 = vmatpush3.bf16.msra.mxu1 %v1742_v35 }
 0x5c4   : > { %1651 = vmatprep.subr.bf16.mxu1 %v1850_v8 }
 0x5c7   : > { %1652 = vmatpush3.bf16.msra.mxu1 %v1743_v36 }
 0x5c8   : > { %1653 = vmatprep.subr.bf16.mxu1 %v1850_v8 }
 0x5cb   : > { %1654 = vmatpush3.bf16.msra.mxu1 %v1744_v37 }
 0x5cc   : > { %1655 = vmatprep.subr.bf16.mxu1 %v1850_v8 }
 0x5cf   : > { %1656 = vmatpush3.bf16.msra.mxu1 %v1745_v38 }
 0x685   : > { %v1127_v4 = vpop.f32.mrb[12].mxu1 }
 0x686   : > { %v1128_v5 = vadd.f32 %v1511_v3, %v1127_v4  ;;  %v1631_v6 = vpop.f32.mrb[13].mxu1 }
 0x687   : > { %v1130_v9 = vpop.f32.mrb[14].mxu1 }
 0x688   : > { %v1133_v10 = vadd.f32 %v1128_v5, %v1997_v0  ;;  %v1632_v11 = vpop.f32.mrb[15].mxu1  ;;  %v1737_v0 = vld [vmem:[%s2225_s9 + $0x8] sm:$0xff]  }
 0x689   : > { %1636 = vmatpush3.bf16.msra.mxu0 %v1737_v0 }
 0x68a   : > { %v1173_v12 = vadd.f32 %v1517_v7, %v1133_v10  ;;  %v1136_v13 = vsel %vm509_vm0, %v1133_v10, 0.0 }
 0x68b   : > { %1137 = vadd.xlane.f32.xlu1 %v1136_v13 }
 0x68c   : > { %1174 = vst.msk [vmem:[#allocation4] sm:$0xff] %vm509_vm0, %v1173_v12 }
 0x693   : > { %v1251_v51 = vld [vmem:[#allocation4] sm:$0xff] }
 0x718   : > { %v1138_v14 = vpop.xlane.xlu1 %1137 }
 0x719   : > { %v1139_v15 = vmul.f32 0.03125, %v1138_v14 }
 0x71b   : > { %v1140_v16 = vsub.f32 %v1133_v10, %v1139_v15 }
 0x71d   : > { %v1141_v17 = vmul.f32 %v1140_v16, %v1140_v16 }
 0x71f   : > { %v1142_v18 = vsel %vm509_vm0, %v1141_v17, 0.0 }
 0x720   : > { %1143 = vadd.xlane.f32.xlu0 %v1142_v18 }
 0x7ad   : > { %v1144_v20 = vpop.xlane.xlu0 %1143 }
 0x7ae   : > { %v1145_v21 = vmul.f32 0.03125, %v1144_v20 }
 0x7b0   : > { %v1146_v22 = vadd.f32 1e-05, %v1145_v21 }
 0x7b2   : > { %1764 = vrsqrt.f32 %v1146_v22 }
 0x7bc   : > { %v1765_v23 = vpop.eup %1764 }
 0x7bd   : > { %v1148_v25 = vmul.f32 %v1765_v23, %v1140_v16 }
 0x7bf   : > { %v1155_v27 = vmul.f32 %v1515_v24, %v1148_v25 }
 0x7c1   : > { %v1162_v28 = vadd.f32 %v1516_v26, %v1155_v27 }
 0x7c3   : > { %v1163_v29 = vpack.c.bf16 %v1162_v28, %v1162_v28 }
 0x7c5   : > { %1165 = vst.msk [vmem:[#allocation3] sm:$0xf] %vm1164_vm6, %v1163_v29 }
 0x7cc   : > { %v1175_v30 = vld [vmem:[#allocation3] sm:$0xf] }
 0x7cd   : > { %1638 = vmatmul.mubr.msk.bf16.vlgmr.msra.gmra.mrb[24].mxu0 %vm509_vm0, %v1175_v30 }
 0x8a0   : > { %v1237_v40 = vpop.f32.mrb[24].mxu0 }
 0x8a1   : > { %v1238_v41 = vadd.f32 %v1518_v39, %v1237_v40  ;;  %v1639_v42 = vpop.f32.mrb[25].mxu0 }
 0x8a2   : > { %v1240_v43 = vpop.f32.mrb[26].mxu0 }
 0x8a3   : > { %v1522_v44 = vmul.f32 -1.702, %v1238_v41  ;;  %v1640_v45 = vpop.f32.mrb[27].mxu0 }
 0x8a5   : > { %v1245_v46 = vmul.f32 1.442695, %v1522_v44 }
 0x8a7   : > { %1766 = vpow2.f32 %v1245_v46 }
 0x8b1   : > { %v1767_v47 = vpop.eup %1766 }
 0x8b2   : > { %v1247_v8 = vadd.f32 1.0, %v1767_v47 }
 0x8b4   : > { %1768 = vrcp.f32 %v1247_v8 }
 0x8be   : > { %v1769_v48 = vpop.eup %1768 }
 0x8bf   : > { %v1250_v49 = vmul.f32 %v1769_v48, %v1238_v41 }
 0x8c1   : > { %v1252_v50 = vpack.c.bf16 %v1250_v49, %v1250_v49 }
 0x8c3   : > { %1658 = vmatmul.mubr.bf16.vlgmr.msra.gmra.mrb[16].mxu1 %v1252_v50 }
 0x996   : > { %v1351_v52 = vpop.f32.mrb[16].mxu1 }
 0x997   : > { %v1357_v53 = vadd.f32 %v1351_v52, %v1251_v51  ;;  %v1659_v54 = vpop.f32.mrb[17].mxu1 }
 0x998   : > { %v1354_v55 = vpop.f32.mrb[18].mxu1 }
 0x999   : > { %1358 = vst.msk [vmem:[#allocation4] sm:$0xff] %vm509_vm0, %v1357_v53  ;;  %v1660_v56 = vpop.f32.mrb[19].mxu1 }
 0x9a0   : > { %v1362_v57 = vld [vmem:[#allocation4] sm:$0xff] }
 0x9a1   : > { %1363 = vst.msk [vmem:[%s483_s23] sm:$0xff] %vm509_vm0, %v1362_v57 }
 0x9a2   : > { %1783 = shalt.err (!%p1780_p5)
}
 0x9a3   : > { %s1784_s19 = scalar_lea.hbm %s2168_s17, 128  ;;  %s1788_s15 = scalar_lea.hbm %s2229_s13, 256 }
 0x9a4   : > { %p1785_p6 = scmp.ne.s32.totalorder %s2168_s17, %s1784_s19  ;;  %p1789_p10 = scmp.lt.u32.totalorder %s2168_s17, %s2229_s13 }
 0x9a5   : > { %p1790_p11 = scmp.lt.u32.totalorder %s1788_s15, %s1784_s19  ;;  %p1792_p13 = scmp.lt.u32.totalorder %s1784_s19, %s2168_s17 }
 0x9a6   : > { %p1786_p7 = pnand %p1785_p6, %p1977_p4 }
 0x9a7   : > { %p1791_p12 = por %p1790_p11, %p1789_p10 }
 0x9a8   : > { %p1787_p9 = pneg %p1786_p7 }
 0x9a9   : > { %p1793_p0 = por %p1792_p13, %p1791_p12 }
 0x9ab   : > { %p1794_p1 = pnand %p1793_p0, %p1787_p9 }
 0x9ad   : > { %1797 = shalt.err (!%p1794_p1)
}
 0x9ae   : > { %1661 = dma.vmem_to_hbm [thread:$0]  (%p1977_p4), %s2170_s24, 128, %s2168_s17, %s1365_s1  }
 0x9af PF: > { %p1667_p2 = scmp.ge.s32.totalorder %s1848_s30, 2  ;;  %s1390_s2 = sand.u32 1, %s1828_s25  }
 0x9b0   : > { %s1391_s14 = scalar_lea.sflag [#allocation6], %s1390_s2 }
 0x9b1   : > { %p1664_p3 = pnand %p1667_p2, %p1984_p8 }
 0x9b3   : > { %1823 = dma.done.wait (!%p1664_p3), %s1391_s14, 128  }
 0x9b4   : > { %1825 = vsyncadd (!%p1664_p3), %s1391_s14, 4294967168  ;;  %s26_s30 = sadd.s32 1, %s1848_s30   ;;  %s2238_s25 = smov %s1832_s26 }
 0x9b5   : > { %p23_p5 = scmp.ge.s32.totalorder %s26_s30, 4   ;;  %s2239_s26 = smov %s1836_s27 }
 0x9b6   : > { %s2240_s27 = smov %s1990_s21  ;;  %s2241_s28 = smov %s1844_s29 }
 0x9b7   : > { %s2242_s29 = smov %s2244_s16  ;;  %25 = sbr.rel (!%p23_p5) target bundleno = 8 (0x8), region = 124 }
 0x9be   :  { %1396 = vsyncpa [#allocation6], 1 }
 0x9bf   :  { %1398 = vsyncpa [#allocation6 + $0x1], 1 }

</bundles_post_ra>
